<compile_context>
chip_gen: v6e
topology: v6e:2x2x1
jax: 0.10.0
libtpu: 0.0.40
codegen_flags: <defaults>
</compile_context>

<pallas_src>
import functools

import jax
import jax.numpy as jnp
from jax import lax
from jax.experimental import pallas as pl
from jax.experimental.pallas import tpu as pltpu

LN_EPS = 1e-5   # PyTorch nn.LayerNorm default
LANE = 128      # TPU lane width


def _round_up(x, m):
    return (x + m - 1) // m * m


def _num_tensorcores():
    # v7x: 2 TensorCores per chip, sharded across "parallel" grid axes.
    try:
        name = str(pltpu.get_tpu_info().chip_version).lower()
        if "v7" in name or "7x" in name:
            return 2
    except Exception:
        pass
    return 1


def _layernorm(h, gamma, beta, d_true):
    """LayerNorm over the first `d_true` lanes of a lane-padded [TB, Dp] tile.

    No lane mask needed: padded lanes of `h` are exactly 0 (zero-padded
    weight columns and bias upstream), so the lane sums already equal the
    true-lane sums; padded gamma/beta are 0 so padded output lanes stay 0.
    All math in f32 (h arrives as an f32 accumulator).
    """
    inv_d = 1.0 / float(d_true)
    mu = jnp.sum(h, axis=-1, keepdims=True) * inv_d
    ex2 = jnp.sum(h * h, axis=-1, keepdims=True) * inv_d
    var = ex2 - mu * mu
    return (h - mu) * lax.rsqrt(var + LN_EPS) * gamma + beta


def trait_head_kernel(x_ref, w1_ref, w2_ref, w3_ref,
                      p1_ref, p2_ref, p3_ref, o_ref,
                      *, d1, d2, t, compute_dtype):
    cdt = compute_dtype
    # dropout = identity (eval); cast to MXU dtype in-kernel (free VPU work).
    x = x_ref[...].astype(cdt)

    b1, g1, be1 = p1_ref[0:1, :], p1_ref[1:2, :], p1_ref[2:3, :]
    b2, g2, be2 = p2_ref[0:1, :], p2_ref[1:2, :], p2_ref[2:3, :]
    b3, g3, be3 = p3_ref[0:1, :], p3_ref[1:2, :], p3_ref[2:3, :]
    g4, be4 = p3_ref[3:4, :], p3_ref[4:5, :]

    # Block 1: Linear(D0->D1) + LayerNorm + ReLU   (Dropout = identity)
    h = jnp.dot(x, w1_ref[...], preferred_element_type=jnp.float32) + b1
    h = jnp.maximum(_layernorm(h, g1, be1, d1), 0.0)

    # Block 2: Linear(D1->D2) + LayerNorm + ReLU   (Dropout = identity)
    h = jnp.dot(h.astype(cdt), w2_ref[...], preferred_element_type=jnp.float32) + b2
    h = jnp.maximum(_layernorm(h, g2, be2, d2), 0.0)

    # Final block: Linear(D2->T) + LayerNorm  (ReLU/Dropout stripped by layers[:-2])
    z = jnp.dot(h.astype(cdt), w3_ref[...], preferred_element_type=jnp.float32) + b3
    z = _layernorm(z, g3, be3, t)

    # Module-level self.layer_norm(num_traits), then sigmoid
    z = _layernorm(z, g4, be4, t)
    o_ref[...] = jax.nn.sigmoid(z).astype(o_ref.dtype)


def prepare_head_params(params, *, compute_dtype=jnp.bfloat16):
    """One-time param prep (hoisted out of the per-call path).

    Pads every feature dim to the 128-lane width (zero padding -> padded lanes
    stay exactly 0 through the whole head), casts weights to the MXU dtype and
    packs the 11 bias/gamma/beta row vectors into 3 small f32 arrays.
    """
    d0, d1 = params["w1"].shape
    d2 = params["w2"].shape[1]
    t = params["w3"].shape[1]
    d0p, d1p, d2p, tp = (_round_up(d, LANE) for d in (d0, d1, d2, t))

    def pad2(a, rows, cols):
        return jnp.pad(a, ((0, rows - a.shape[0]), (0, cols - a.shape[1])))

    def pad_row(a, cols):
        a = jnp.asarray(a, jnp.float32).reshape(1, -1)
        return jnp.pad(a, ((0, 0), (0, cols - a.shape[1])))

    w1 = pad2(params["w1"], d0p, d1p).astype(compute_dtype)
    w2 = pad2(params["w2"], d1p, d2p).astype(compute_dtype)
    w3 = pad2(params["w3"], d2p, tp).astype(compute_dtype)
    p1 = jnp.concatenate([pad_row(params[k], d1p) for k in ("b1", "g1", "be1")], 0)
    p2 = jnp.concatenate([pad_row(params[k], d2p) for k in ("b2", "g2", "be2")], 0)
    p3 = jnp.concatenate([pad_row(params[k], tp)
                          for k in ("b3", "g3", "be3", "g4", "be4")], 0)

    return dict(w1=w1, w2=w2, w3=w3, p1=p1, p2=p2, p3=p3,
                dims=(d0, d1, d2, t), compute_dtype=compute_dtype)


def trait_predictor_head(x, prepared, *, block_batch=None):
    """x: [B, D0] pooled encoder output (f32). prepared: prepare_head_params().

    Returns [B, num_traits] float32 sigmoid trait scores.
    """
    B, d0 = x.shape
    d0_true, d1, d2, t = prepared["dims"]
    assert d0 == d0_true, "input feature dim mismatch"
    cdt = prepared["compute_dtype"]
    d0p = prepared["w1"].shape[0]
    tp = prepared["p3"].shape[1]

    # --- batch tiling: as large as practical (working set << VMEM) -----------
    bp8 = _round_up(B, 8)
    if block_batch is None:
        block_batch = 512
    tb = min(block_batch, bp8)
    # v7x: guarantee >= 2 "parallel" grid steps so both TensorCores are used.
    ncores = _num_tensorcores()
    if ncores > 1 and bp8 > 8 and pl.cdiv(bp8, tb) < ncores:
        tb = max(8, _round_up(pl.cdiv(bp8, ncores), 8))
    bp = _round_up(B, tb)

    # x stays in the caller dtype (cast happens in-kernel); pad only if needed.
    if bp != B or d0p != d0:
        x = jnp.pad(x, ((0, bp - B), (0, d0p - d0)))

    grid = (bp // tb,)

    def tile_spec(cols):                  # x / output: tiled along batch
        return pl.BlockSpec((tb, cols), lambda i: (i, 0))

    def resident_spec(a):                 # params: same block every step -> VMEM-resident
        return pl.BlockSpec(a.shape, lambda i: (0, 0))

    kernel = functools.partial(trait_head_kernel, d1=d1, d2=d2, t=t,
                               compute_dtype=cdt)

    out = pl.pallas_call(
        kernel,
        out_shape=jax.ShapeDtypeStruct((bp, tp), jnp.float32),
        grid=grid,
        in_specs=[tile_spec(d0p),
                  resident_spec(prepared["w1"]),
                  resident_spec(prepared["w2"]),
                  resident_spec(prepared["w3"]),
                  resident_spec(prepared["p1"]),
                  resident_spec(prepared["p2"]),
                  resident_spec(prepared["p3"])],
        out_specs=tile_spec(tp),
        compiler_params=pltpu.CompilerParams(
            dimension_semantics=("parallel",)),
    )(x, prepared["w1"], prepared["w2"], prepared["w3"],
      prepared["p1"], prepared["p2"], prepared["p3"])

    return out[:B, :t]


def init_params(key, input_dim, hidden_dims, num_traits):
    dims = [input_dim] + list(hidden_dims) + [num_traits]
    params = {}
    ks = jax.random.split(key, 2 * (len(dims) - 1))
    for i in range(len(dims) - 1):
        fan_in = dims[i]
        bound = 1.0 / (fan_in ** 0.5)
        params[f"w{i+1}"] = jax.random.uniform(ks[2 * i], (dims[i], dims[i + 1]),
                                               jnp.float32, -bound, bound)
        params[f"b{i+1}"] = jax.random.uniform(ks[2 * i + 1], (1, dims[i + 1]),
                                               jnp.float32, -bound, bound)
        # LayerNorm affine params (PyTorch default init: ones / zeros)
        params[f"g{i+1}"] = jnp.ones((1, dims[i + 1]), jnp.float32)
        params[f"be{i+1}"] = jnp.zeros((1, dims[i + 1]), jnp.float32)
    # module-level self.layer_norm(num_traits)
    params["g4"] = jnp.ones((1, num_traits), jnp.float32)
    params["be4"] = jnp.zeros((1, num_traits), jnp.float32)
    return params


def reference_head(x, p):
    def ln(h, g, b):
        mu = h.mean(-1, keepdims=True)
        var = ((h - mu) ** 2).mean(-1, keepdims=True)
        return (h - mu) / jnp.sqrt(var + LN_EPS) * g + b
    h = jnp.maximum(ln(x @ p["w1"] + p["b1"], p["g1"], p["be1"]), 0.0)
    h = jnp.maximum(ln(h @ p["w2"] + p["b2"], p["g2"], p["be2"]), 0.0)
    z = ln(h @ p["w3"] + p["b3"], p["g3"], p["be3"])
    z = ln(z, p["g4"], p["be4"])
    return jax.nn.sigmoid(z)


if __name__ == "__main__":
    # TODO(synk): the frozen BERT encoder (AutoModel.from_pretrained) has no
    # Pallas equivalent here; its pooled output is synthesized as the input.
    key = jax.random.PRNGKey(0)
    k_x, k_x2, k_p = jax.random.split(key, 3)

    INPUT_DIM = 128       # stands in for encoder hidden_size (768 in BERT)
    HIDDEN_DIMS = [64, 32]
    NUM_TRAITS = 5
    params = init_params(k_p, INPUT_DIM, HIDDEN_DIMS, NUM_TRAITS)

    # --- run 1: small batch, f32 compute -> tight check vs reference ---------
    prepared_f32 = prepare_head_params(params, compute_dtype=jnp.float32)
    B1 = 16
    x1 = jax.random.normal(k_x, (B1, INPUT_DIM), jnp.float32)
    out1 = jax.block_until_ready(trait_predictor_head(x1, prepared_f32))
    ref1 = reference_head(x1, params)
    assert out1.shape == (B1, NUM_TRAITS)
    assert jnp.allclose(out1, ref1, atol=1e-4, rtol=1e-4), "f32 mismatch vs reference"

    # --- run 2: multi-step batch grid, bf16 MXU path (all generations) -------
    prepared_bf16 = prepare_head_params(params, compute_dtype=jnp.bfloat16)
    B2 = 200
    x2 = jax.random.normal(k_x2, (B2, INPUT_DIM), jnp.float32)
    # block_batch=64 only to force a multi-step grid at this tiny test batch;
    # production default is 512.
    out2 = jax.block_until_ready(
        trait_predictor_head(x2, prepared_bf16, block_batch=64))
    ref2 = reference_head(x2, params)
    assert out2.shape == (B2, NUM_TRAITS)
    assert jnp.allclose(out2, ref2, atol=3e-2), "bf16 mismatch vs reference"

    # --- run 3: default large-tile path (single step at this batch) ----------
    out3 = jax.block_until_ready(trait_predictor_head(x2, prepared_bf16))
    assert jnp.allclose(out3, ref2, atol=3e-2), "bf16 (default tile) mismatch"

    print("KERNEL_OK")
</pallas_src>

<mosaic_0001>
module attributes {stable_mosaic.version = 11 : i64} {
  func.func @trait_head_kernel(%arg0: i32, %arg1: memref<16x128xf32, #tpu.memory_space<vmem>>, %arg2: memref<128x128xf32, #tpu.memory_space<vmem>>, %arg3: memref<128x128xf32, #tpu.memory_space<vmem>>, %arg4: memref<128x128xf32, #tpu.memory_space<vmem>>, %arg5: memref<3x128xf32, #tpu.memory_space<vmem>>, %arg6: memref<3x128xf32, #tpu.memory_space<vmem>>, %arg7: memref<5x128xf32, #tpu.memory_space<vmem>>, %arg8: memref<16x128xf32, #tpu.memory_space<vmem>>) attributes {dimension_semantics = [#tpu.dimension_semantics<parallel>], iteration_bounds = array<i64: 1>, scalar_prefetch = 0 : i64, scratch_operands = 0 : i64, tpu.core_type = #tpu.core_type<tc>, window_params = [{transform_indices = @transform_0, window_bounds = array<i64: 16, 128>}, {pipeline_mode = #tpu.pipeline_mode<synchronous>, transform_indices = @transform_1, window_bounds = array<i64: 128, 128>}, {pipeline_mode = #tpu.pipeline_mode<synchronous>, transform_indices = @transform_2, window_bounds = array<i64: 128, 128>}, {pipeline_mode = #tpu.pipeline_mode<synchronous>, transform_indices = @transform_3, window_bounds = array<i64: 128, 128>}, {pipeline_mode = #tpu.pipeline_mode<synchronous>, transform_indices = @transform_4, window_bounds = array<i64: 3, 128>}, {pipeline_mode = #tpu.pipeline_mode<synchronous>, transform_indices = @transform_5, window_bounds = array<i64: 3, 128>}, {pipeline_mode = #tpu.pipeline_mode<synchronous>, transform_indices = @transform_6, window_bounds = array<i64: 5, 128>}, {transform_indices = @transform_7, window_bounds = array<i64: 16, 128>}]} {
    %c0 = arith.constant 0 : index
    %c0_0 = arith.constant 0 : index
    %0 = vector.load %arg1[%c0, %c0_0] : memref<16x128xf32, #tpu.memory_space<vmem>>, vector<16x128xf32>
    %c0_1 = arith.constant 0 : index
    %c0_2 = arith.constant 0 : index
    %1 = vector.load %arg5[%c0_1, %c0_2] : memref<3x128xf32, #tpu.memory_space<vmem>>, vector<1x128xf32>
    %c1 = arith.constant 1 : index
    %c0_3 = arith.constant 0 : index
    %2 = vector.load %arg5[%c1, %c0_3] : memref<3x128xf32, #tpu.memory_space<vmem>>, vector<1x128xf32>
    %c2 = arith.constant 2 : index
    %c0_4 = arith.constant 0 : index
    %3 = vector.load %arg5[%c2, %c0_4] : memref<3x128xf32, #tpu.memory_space<vmem>>, vector<1x128xf32>
    %c0_5 = arith.constant 0 : index
    %c0_6 = arith.constant 0 : index
    %4 = vector.load %arg6[%c0_5, %c0_6] : memref<3x128xf32, #tpu.memory_space<vmem>>, vector<1x128xf32>
    %c1_7 = arith.constant 1 : index
    %c0_8 = arith.constant 0 : index
    %5 = vector.load %arg6[%c1_7, %c0_8] : memref<3x128xf32, #tpu.memory_space<vmem>>, vector<1x128xf32>
    %c2_9 = arith.constant 2 : index
    %c0_10 = arith.constant 0 : index
    %6 = vector.load %arg6[%c2_9, %c0_10] : memref<3x128xf32, #tpu.memory_space<vmem>>, vector<1x128xf32>
    %c0_11 = arith.constant 0 : index
    %c0_12 = arith.constant 0 : index
    %7 = vector.load %arg7[%c0_11, %c0_12] : memref<5x128xf32, #tpu.memory_space<vmem>>, vector<1x128xf32>
    %c1_13 = arith.constant 1 : index
    %c0_14 = arith.constant 0 : index
    %8 = vector.load %arg7[%c1_13, %c0_14] : memref<5x128xf32, #tpu.memory_space<vmem>>, vector<1x128xf32>
    %c2_15 = arith.constant 2 : index
    %c0_16 = arith.constant 0 : index
    %9 = vector.load %arg7[%c2_15, %c0_16] : memref<5x128xf32, #tpu.memory_space<vmem>>, vector<1x128xf32>
    %c3 = arith.constant 3 : index
    %c0_17 = arith.constant 0 : index
    %10 = vector.load %arg7[%c3, %c0_17] : memref<5x128xf32, #tpu.memory_space<vmem>>, vector<1x128xf32>
    %c4 = arith.constant 4 : index
    %c0_18 = arith.constant 0 : index
    %11 = vector.load %arg7[%c4, %c0_18] : memref<5x128xf32, #tpu.memory_space<vmem>>, vector<1x128xf32>
    %c0_19 = arith.constant 0 : index
    %c0_20 = arith.constant 0 : index
    %12 = vector.load %arg2[%c0_19, %c0_20] : memref<128x128xf32, #tpu.memory_space<vmem>>, vector<128x128xf32>
    %cst = arith.constant dense<0.000000e+00> : vector<16x128xf32>
    %13 = tpu.matmul %0, %12, %cst {dimension_numbers = #tpu.dot_dimension_numbers<[1], [0], [0], [1], [0, 0, 1, 1], [], []>} : vector<16x128xf32>, vector<128x128xf32>, vector<16x128xf32> -> vector<16x128xf32>
    %14 = vector.broadcast %1 : vector<1x128xf32> to vector<16x128xf32>
    %15 = arith.addf %13, %14 : vector<16x128xf32>
    %cst_21 = arith.constant dense<0.000000e+00> : vector<16xf32>
    %16 = vector.multi_reduction <add>, %15, %cst_21 [1] : vector<16x128xf32> to vector<16xf32>
    %17 = vector.shape_cast %16 : vector<16xf32> to vector<16x1xf32>
    %cst_22 = arith.constant 1.562500e-02 : f32
    %18 = vector.broadcast %cst_22 : f32 to vector<16x1xf32>
    %19 = arith.mulf %17, %18 : vector<16x1xf32>
    %20 = arith.mulf %15, %15 : vector<16x128xf32>
    %cst_23 = arith.constant dense<0.000000e+00> : vector<16xf32>
    %21 = vector.multi_reduction <add>, %20, %cst_23 [1] : vector<16x128xf32> to vector<16xf32>
    %22 = vector.shape_cast %21 : vector<16xf32> to vector<16x1xf32>
    %cst_24 = arith.constant 1.562500e-02 : f32
    %23 = vector.broadcast %cst_24 : f32 to vector<16x1xf32>
    %24 = arith.mulf %22, %23 : vector<16x1xf32>
    %25 = arith.mulf %19, %19 : vector<16x1xf32>
    %26 = arith.subf %24, %25 : vector<16x1xf32>
    %27 = vector.broadcast %19 : vector<16x1xf32> to vector<16x128xf32>
    %28 = arith.subf %15, %27 : vector<16x128xf32>
    %cst_25 = arith.constant 9.99999974E-6 : f32
    %29 = vector.broadcast %cst_25 : f32 to vector<16x1xf32>
    %30 = arith.addf %26, %29 : vector<16x1xf32>
    %31 = math.rsqrt %30 : vector<16x1xf32>
    %32 = vector.broadcast %31 : vector<16x1xf32> to vector<16x128xf32>
    %33 = arith.mulf %28, %32 : vector<16x128xf32>
    %34 = vector.broadcast %2 : vector<1x128xf32> to vector<16x128xf32>
    %35 = arith.mulf %33, %34 : vector<16x128xf32>
    %36 = vector.broadcast %3 : vector<1x128xf32> to vector<16x128xf32>
    %37 = arith.addf %35, %36 : vector<16x128xf32>
    %cst_26 = arith.constant 0.000000e+00 : f32
    %38 = vector.broadcast %cst_26 : f32 to vector<16x128xf32>
    %39 = arith.maximumf %37, %38 : vector<16x128xf32>
    %c0_27 = arith.constant 0 : index
    %c0_28 = arith.constant 0 : index
    %40 = vector.load %arg3[%c0_27, %c0_28] : memref<128x128xf32, #tpu.memory_space<vmem>>, vector<128x128xf32>
    %cst_29 = arith.constant dense<0.000000e+00> : vector<16x128xf32>
    %41 = tpu.matmul %39, %40, %cst_29 {dimension_numbers = #tpu.dot_dimension_numbers<[1], [0], [0], [1], [0, 0, 1, 1], [], []>} : vector<16x128xf32>, vector<128x128xf32>, vector<16x128xf32> -> vector<16x128xf32>
    %42 = vector.broadcast %4 : vector<1x128xf32> to vector<16x128xf32>
    %43 = arith.addf %41, %42 : vector<16x128xf32>
    %cst_30 = arith.constant dense<0.000000e+00> : vector<16xf32>
    %44 = vector.multi_reduction <add>, %43, %cst_30 [1] : vector<16x128xf32> to vector<16xf32>
    %45 = vector.shape_cast %44 : vector<16xf32> to vector<16x1xf32>
    %cst_31 = arith.constant 3.125000e-02 : f32
    %46 = vector.broadcast %cst_31 : f32 to vector<16x1xf32>
    %47 = arith.mulf %45, %46 : vector<16x1xf32>
    %48 = arith.mulf %43, %43 : vector<16x128xf32>
    %cst_32 = arith.constant dense<0.000000e+00> : vector<16xf32>
    %49 = vector.multi_reduction <add>, %48, %cst_32 [1] : vector<16x128xf32> to vector<16xf32>
    %50 = vector.shape_cast %49 : vector<16xf32> to vector<16x1xf32>
    %cst_33 = arith.constant 3.125000e-02 : f32
    %51 = vector.broadcast %cst_33 : f32 to vector<16x1xf32>
    %52 = arith.mulf %50, %51 : vector<16x1xf32>
    %53 = arith.mulf %47, %47 : vector<16x1xf32>
    %54 = arith.subf %52, %53 : vector<16x1xf32>
    %55 = vector.broadcast %47 : vector<16x1xf32> to vector<16x128xf32>
    %56 = arith.subf %43, %55 : vector<16x128xf32>
    %cst_34 = arith.constant 9.99999974E-6 : f32
    %57 = vector.broadcast %cst_34 : f32 to vector<16x1xf32>
    %58 = arith.addf %54, %57 : vector<16x1xf32>
    %59 = math.rsqrt %58 : vector<16x1xf32>
    %60 = vector.broadcast %59 : vector<16x1xf32> to vector<16x128xf32>
    %61 = arith.mulf %56, %60 : vector<16x128xf32>
    %62 = vector.broadcast %5 : vector<1x128xf32> to vector<16x128xf32>
    %63 = arith.mulf %61, %62 : vector<16x128xf32>
    %64 = vector.broadcast %6 : vector<1x128xf32> to vector<16x128xf32>
    %65 = arith.addf %63, %64 : vector<16x128xf32>
    %cst_35 = arith.constant 0.000000e+00 : f32
    %66 = vector.broadcast %cst_35 : f32 to vector<16x128xf32>
    %67 = arith.maximumf %65, %66 : vector<16x128xf32>
    %c0_36 = arith.constant 0 : index
    %c0_37 = arith.constant 0 : index
    %68 = vector.load %arg4[%c0_36, %c0_37] : memref<128x128xf32, #tpu.memory_space<vmem>>, vector<128x128xf32>
    %cst_38 = arith.constant dense<0.000000e+00> : vector<16x128xf32>
    %69 = tpu.matmul %67, %68, %cst_38 {dimension_numbers = #tpu.dot_dimension_numbers<[1], [0], [0], [1], [0, 0, 1, 1], [], []>} : vector<16x128xf32>, vector<128x128xf32>, vector<16x128xf32> -> vector<16x128xf32>
    %70 = vector.broadcast %7 : vector<1x128xf32> to vector<16x128xf32>
    %71 = arith.addf %69, %70 : vector<16x128xf32>
    %cst_39 = arith.constant dense<0.000000e+00> : vector<16xf32>
    %72 = vector.multi_reduction <add>, %71, %cst_39 [1] : vector<16x128xf32> to vector<16xf32>
    %73 = vector.shape_cast %72 : vector<16xf32> to vector<16x1xf32>
    %cst_40 = arith.constant 2.000000e-01 : f32
    %74 = vector.broadcast %cst_40 : f32 to vector<16x1xf32>
    %75 = arith.mulf %73, %74 : vector<16x1xf32>
    %76 = arith.mulf %71, %71 : vector<16x128xf32>
    %cst_41 = arith.constant dense<0.000000e+00> : vector<16xf32>
    %77 = vector.multi_reduction <add>, %76, %cst_41 [1] : vector<16x128xf32> to vector<16xf32>
    %78 = vector.shape_cast %77 : vector<16xf32> to vector<16x1xf32>
    %cst_42 = arith.constant 2.000000e-01 : f32
    %79 = vector.broadcast %cst_42 : f32 to vector<16x1xf32>
    %80 = arith.mulf %78, %79 : vector<16x1xf32>
    %81 = arith.mulf %75, %75 : vector<16x1xf32>
    %82 = arith.subf %80, %81 : vector<16x1xf32>
    %83 = vector.broadcast %75 : vector<16x1xf32> to vector<16x128xf32>
    %84 = arith.subf %71, %83 : vector<16x128xf32>
    %cst_43 = arith.constant 9.99999974E-6 : f32
    %85 = vector.broadcast %cst_43 : f32 to vector<16x1xf32>
    %86 = arith.addf %82, %85 : vector<16x1xf32>
    %87 = math.rsqrt %86 : vector<16x1xf32>
    %88 = vector.broadcast %87 : vector<16x1xf32> to vector<16x128xf32>
    %89 = arith.mulf %84, %88 : vector<16x128xf32>
    %90 = vector.broadcast %8 : vector<1x128xf32> to vector<16x128xf32>
    %91 = arith.mulf %89, %90 : vector<16x128xf32>
    %92 = vector.broadcast %9 : vector<1x128xf32> to vector<16x128xf32>
    %93 = arith.addf %91, %92 : vector<16x128xf32>
    %cst_44 = arith.constant dense<0.000000e+00> : vector<16xf32>
    %94 = vector.multi_reduction <add>, %93, %cst_44 [1] : vector<16x128xf32> to vector<16xf32>
    %95 = vector.shape_cast %94 : vector<16xf32> to vector<16x1xf32>
    %cst_45 = arith.constant 2.000000e-01 : f32
    %96 = vector.broadcast %cst_45 : f32 to vector<16x1xf32>
    %97 = arith.mulf %95, %96 : vector<16x1xf32>
    %98 = arith.mulf %93, %93 : vector<16x128xf32>
    %cst_46 = arith.constant dense<0.000000e+00> : vector<16xf32>
    %99 = vector.multi_reduction <add>, %98, %cst_46 [1] : vector<16x128xf32> to vector<16xf32>
    %100 = vector.shape_cast %99 : vector<16xf32> to vector<16x1xf32>
    %cst_47 = arith.constant 2.000000e-01 : f32
    %101 = vector.broadcast %cst_47 : f32 to vector<16x1xf32>
    %102 = arith.mulf %100, %101 : vector<16x1xf32>
    %103 = arith.mulf %97, %97 : vector<16x1xf32>
    %104 = arith.subf %102, %103 : vector<16x1xf32>
    %105 = vector.broadcast %97 : vector<16x1xf32> to vector<16x128xf32>
    %106 = arith.subf %93, %105 : vector<16x128xf32>
    %cst_48 = arith.constant 9.99999974E-6 : f32
    %107 = vector.broadcast %cst_48 : f32 to vector<16x1xf32>
    %108 = arith.addf %104, %107 : vector<16x1xf32>
    %109 = math.rsqrt %108 : vector<16x1xf32>
    %110 = vector.broadcast %109 : vector<16x1xf32> to vector<16x128xf32>
    %111 = arith.mulf %106, %110 : vector<16x128xf32>
    %112 = vector.broadcast %10 : vector<1x128xf32> to vector<16x128xf32>
    %113 = arith.mulf %111, %112 : vector<16x128xf32>
    %114 = vector.broadcast %11 : vector<1x128xf32> to vector<16x128xf32>
    %115 = arith.addf %113, %114 : vector<16x128xf32>
    %116 = arith.negf %115 : vector<16x128xf32>
    %117 = math.exp %116 : vector<16x128xf32>
    %cst_49 = arith.constant 1.000000e+00 : f32
    %118 = vector.broadcast %cst_49 : f32 to vector<16x128xf32>
    %119 = arith.addf %118, %117 : vector<16x128xf32>
    %120 = arith.divf %118, %119 : vector<16x128xf32>
    %c0_50 = arith.constant 0 : index
    %c0_51 = arith.constant 0 : index
    %121 = vector.load %arg8[%c0_50, %c0_51] : memref<16x128xf32, #tpu.memory_space<vmem>>, vector<16x128xf32>
    tpu.vector_store %arg8[%c0_50, %c0_51], %120 {strides = array<i32>} : memref<16x128xf32, #tpu.memory_space<vmem>>, vector<16x128xf32>,
    return
  }
  func.func @transform_0(%arg0: i32) -> (i32, i32) {
    %c0_i32 = arith.constant 0 : i32
    %c0_i32_0 = arith.constant 0 : i32
    return %arg0, %c0_i32 : i32, i32
  }
  func.func @transform_1(%arg0: i32) -> (i32, i32) {
    %c0_i32 = arith.constant 0 : i32
    %c0_i32_0 = arith.constant 0 : i32
    %c0_i32_1 = arith.constant 0 : i32
    return %c0_i32, %c0_i32_0 : i32, i32
  }
  func.func @transform_2(%arg0: i32) -> (i32, i32) {
    %c0_i32 = arith.constant 0 : i32
    %c0_i32_0 = arith.constant 0 : i32
    %c0_i32_1 = arith.constant 0 : i32
    return %c0_i32, %c0_i32_0 : i32, i32
  }
  func.func @transform_3(%arg0: i32) -> (i32, i32) {
    %c0_i32 = arith.constant 0 : i32
    %c0_i32_0 = arith.constant 0 : i32
    %c0_i32_1 = arith.constant 0 : i32
    return %c0_i32, %c0_i32_0 : i32, i32
  }
  func.func @transform_4(%arg0: i32) -> (i32, i32) {
    %c0_i32 = arith.constant 0 : i32
    %c0_i32_0 = arith.constant 0 : i32
    %c0_i32_1 = arith.constant 0 : i32
    return %c0_i32, %c0_i32_0 : i32, i32
  }
  func.func @transform_5(%arg0: i32) -> (i32, i32) {
    %c0_i32 = arith.constant 0 : i32
    %c0_i32_0 = arith.constant 0 : i32
    %c0_i32_1 = arith.constant 0 : i32
    return %c0_i32, %c0_i32_0 : i32, i32
  }
  func.func @transform_6(%arg0: i32) -> (i32, i32) {
    %c0_i32 = arith.constant 0 : i32
    %c0_i32_0 = arith.constant 0 : i32
    %c0_i32_1 = arith.constant 0 : i32
    return %c0_i32, %c0_i32_0 : i32, i32
  }
  func.func @transform_7(%arg0: i32) -> (i32, i32) {
    %c0_i32 = arith.constant 0 : i32
    %c0_i32_0 = arith.constant 0 : i32
    return %arg0, %c0_i32 : i32, i32
  }
}

</mosaic_0001>

<bundles_post_ra>
// kernel: tpu_custom_call.1
= control target key start
LH: loop header
LB: loop body
LE: loop exit
PB: predicated region body
PF: predicated region fallthrough
CT: control target
= control target key end

     0   :  { %12 = vsyncpa [#allocation3], 0  ;;  %s1072_s0 = inlined_call_operand.hbm [shape: f32[16,128], index: 0, kind: input, shape index: {}]   ;;  %s1073_s1 = inlined_call_operand.hbm [shape: f32[128,128], index: 1, kind: input, shape index: {}]   ;;  %s1074_s2 = inlined_call_operand.hbm [shape: f32[128,128], index: 2, kind: input, shape index: {}]   ;;  %s1075_s3 = inlined_call_operand.hbm [shape: f32[128,128], index: 3, kind: input, shape index: {}]   ;;  %s1076_s4 = inlined_call_operand.hbm [shape: f32[3,128], index: 4, kind: input, shape index: {}]   ;;  %s1077_s5 = inlined_call_operand.hbm [shape: f32[3,128], index: 5, kind: input, shape index: {}]   ;;  %s1078_s6 = inlined_call_operand.vmem [shape: f32[5,128], index: 6, kind: input, shape index: {}]   ;;  %s1079_s7 = inlined_call_operand.hbm [shape: f32[16,128], index: 7, kind: output, shape index: {}]  }
   0x1   :  { %13 = vsyncpa [#allocation6], 0 }
   0x2   :  { %14 = vsyncpa [#allocation9], 0 }
   0x3   :  { %15 = vsyncpa [#allocation12], 0 }
   0x4   :  { %16 = vsyncpa [#allocation4], 0  ;;  %s948_s24 = smov [#allocation5]   ;;  %s949_s26 = smov [#allocation8]  }
   0x5   :  { %s34_s25 = sshll.u32 %s948_s24, 4  ;;  %s58_s27 = sshll.u32 %s949_s26, 4  ;;  %s35_s25 = int_to_ptr.vmem [resolvable:$true] %s34_s25  ;;  %s59_s27 = int_to_ptr.vmem [resolvable:$true] %s58_s27 }
   0x6   :  { %s806_s28 = scalar_lea.vmem %s35_s25, 2048  ;;  %p811_p1 = scmp.lt.s32.totalorder %s35_s25, %s35_s25 }
   0x7   :  { %p807_p0 = scmp.ne.s32.totalorder %s35_s25, %s806_s28  ;;  %p812_p2 = scmp.lt.s32.totalorder %s806_s28, %s806_s28 }
   0x9   :  { %p813_p3 = por %p812_p2, %p811_p1 }
   0xb   :  { %p814_p4 = pnand %p813_p3, %p807_p0 }
   0xd   :  { %817 = shalt.err (!%p814_p4)
}
   0xe   :  { %s950_s29 = smov 128   ;;  %s951_s30 = smov 8  }
   0xf   :  { %40 = dma.hbm_to_vmem [thread:$0]  %s1073_s1, 2048, %s35_s25, [#allocation6], %s950_s29, %s950_s29, %s951_s30  }
  0x10   :  { %s826_s10 = scalar_lea.vmem %s59_s27, 2048  ;;  %p831_p6 = scmp.lt.s32.totalorder %s59_s27, %s59_s27 }
  0x11   :  { %p827_p5 = scmp.ne.s32.totalorder %s59_s27, %s826_s10  ;;  %p832_p7 = scmp.lt.s32.totalorder %s826_s10, %s826_s10 }
  0x13   :  { %p833_p8 = por %p832_p7, %p831_p6 }
  0x15   :  { %p834_p9 = pnand %p833_p8, %p827_p5 }
  0x17   :  { %837 = shalt.err (!%p834_p9)
}
  0x18   :  { %64 = dma.hbm_to_vmem [thread:$0]  %s1075_s3, 2048, %s59_s27, [#allocation9], %s950_s29, %s950_s29, %s951_s30  }
  0x19   :  { %s952_s13 = smov [#allocation2]   ;;  %s953_s15 = smov [#allocation7]  }
  0x1a   :  { %s22_s14 = sshll.u32 %s952_s13, 4  ;;  %s46_s16 = sshll.u32 %s953_s15, 4  ;;  %s23_s14 = int_to_ptr.vmem [resolvable:$true] %s22_s14  ;;  %s47_s16 = int_to_ptr.vmem [resolvable:$true] %s46_s16 }
  0x1b   :  { %s846_s1 = scalar_lea.vmem %s23_s14, 256  ;;  %p851_p11 = scmp.lt.s32.totalorder %s23_s14, %s23_s14 }
  0x1c   :  { %p847_p10 = scmp.ne.s32.totalorder %s23_s14, %s846_s1  ;;  %p852_p12 = scmp.lt.s32.totalorder %s846_s1, %s846_s1 }
  0x1e   :  { %p853_p13 = por %p852_p12, %p851_p11 }
  0x20   :  { %p854_p0 = pnand %p853_p13, %p847_p10 }
  0x22   :  { %857 = shalt.err (!%p854_p0)
}
  0x23   :  { %28 = dma.hbm_to_vmem [thread:$0]  %s1072_s0, 256, %s23_s14, [#allocation3], %s950_s29, %s950_s29, %s951_s30  }
  0x24   :  { %s866_s3 = scalar_lea.vmem %s47_s16, 2048  ;;  %p871_p2 = scmp.lt.s32.totalorder %s47_s16, %s47_s16 }
  0x25   :  { %p867_p1 = scmp.ne.s32.totalorder %s47_s16, %s866_s3  ;;  %p872_p3 = scmp.lt.s32.totalorder %s866_s3, %s866_s3 }
  0x27   :  { %p873_p4 = por %p872_p3, %p871_p2 }
  0x29   :  { %p874_p5 = pnand %p873_p4, %p867_p1 }
  0x2b   :  { %877 = shalt.err (!%p874_p5)
}
  0x2c   :  { %52 = dma.hbm_to_vmem [thread:$0]  %s1074_s2, 2048, %s47_s16, [#allocation6], %s950_s29, %s950_s29, %s951_s30  }
  0x2d   :  { %s954_s21 = smov [#allocation10]   ;;  %s955_s23 = smov [#allocation11]  }
  0x2e   :  { %s71_s22 = sshll.u32 %s954_s21, 4  ;;  %s81_s24 = sshll.u32 %s955_s23, 4  ;;  %s72_s22 = int_to_ptr.vmem [resolvable:$true] %s71_s22  ;;  %s82_s24 = int_to_ptr.vmem [resolvable:$true] %s81_s24 }
  0x2f   :  { %s886_s0 = scalar_lea.vmem %s72_s22, 64  ;;  %p891_p7 = scmp.lt.s32.totalorder %s72_s22, %s72_s22 }
  0x30   :  { %p887_p6 = scmp.ne.s32.totalorder %s72_s22, %s886_s0  ;;  %p892_p8 = scmp.lt.s32.totalorder %s886_s0, %s886_s0 }
  0x32   :  { %p893_p9 = por %p892_p8, %p891_p7 }
  0x34   :  { %p894_p10 = pnand %p893_p9, %p887_p6 }
  0x36   :  { %897 = shalt.err (!%p894_p10)
}
  0x37   :  { %74 = dma.hbm_to_vmem [thread:$0]  %s1076_s4, 64, %s72_s22, [#allocation9]  }
  0x38   :  { %s906_s27 = scalar_lea.vmem %s82_s24, 64  ;;  %p911_p12 = scmp.lt.s32.totalorder %s82_s24, %s82_s24 }
  0x39   :  { %p907_p11 = scmp.ne.s32.totalorder %s82_s24, %s906_s27  ;;  %p912_p13 = scmp.lt.s32.totalorder %s906_s27, %s906_s27 }
  0x3b   :  { %p913_p0 = por %p912_p13, %p911_p12 }
  0x3d   :  { %p914_p1 = pnand %p913_p0, %p907_p11 }
  0x3f   :  { %917 = shalt.err (!%p914_p1)
}
  0x40   :  { %84 = dma.hbm_to_vmem [thread:$0]  %s1077_s5, 64, %s82_s24, [#allocation12]  }
  0x41   :  { %938 = dma.done.wait [#allocation3], 256  }
  0x42   :  { %939 = vsyncadd [#allocation3], 4294967040 }
  0x43   :  { %940 = dma.done.wait [#allocation6], 4096  }
  0x44   :  { %941 = vsyncadd [#allocation6], 4294963200 }
  0x45   :  { %942 = dma.done.wait [#allocation9], 2112  }
  0x46   :  { %943 = vsyncadd [#allocation9], 4294965184 }
  0x47   :  { %944 = dma.done.wait [#allocation12], 64  }
  0x48   :  { %945 = vsyncadd [#allocation12], 4294967232  ;;  %v133_v0 = vld [vmem:[#allocation5 + $0x78] sm:$0xff]  ;;  %v132_v1 = vld [vmem:[#allocation5 + $0x70] sm:$0xff]  ;;  %s956_s16 = smov [#allocation13]  }
  0x49   :  { %660 = vmatprep.subr.mxu0 %v133_v0  ;;  %v131_v2 = vld [vmem:[#allocation5 + $0x68] sm:$0xff]  ;;  %v130_v3 = vld [vmem:[#allocation5 + $0x60] sm:$0xff]  ;;  %v105_v4 = vld [vmem:[#allocation2] sm:$0xff]  ;;  %s578_s1 = sshll.u32 %s956_s16, 4  ;;  %s579_s1 = int_to_ptr.vmem [resolvable:$true] %s578_s1 }
  0x4a   :  { %661 = vmatpush3.msra.mxu0 %v133_v0  ;;  %v129_v5 = vld [vmem:[#allocation5 + $0x58] sm:$0xff]  ;;  %692 = vmatprep.mubr.f32.mxu0 %v105_v4  ;;  %v128_v6 = vld [vmem:[#allocation5 + $0x50] sm:$0xff]  ;;  %v127_v7 = vld [vmem:[#allocation5 + $0x48] sm:$0xff]  ;;  %p923_p3 = scmp.lt.s32.totalorder %s579_s1, %s579_s1 }
  0x4b   :  { %662 = vmatprep.subr.mxu0 %v132_v1  ;;  %v126_v8 = vld [vmem:[#allocation5 + $0x40] sm:$0xff]  ;;  %v125_v9 = vld [vmem:[#allocation5 + $0x38] sm:$0xff]  ;;  %v124_v10 = vld [vmem:[#allocation5 + $0x30] sm:$0xff] }
  0x4c   :  { %663 = vmatpush3.msra.mxu0 %v132_v1  ;;  %v123_v11 = vld [vmem:[#allocation5 + $0x28] sm:$0xff]  ;;  %v122_v12 = vld [vmem:[#allocation5 + $0x20] sm:$0xff]  ;;  %v121_v13 = vld [vmem:[#allocation5 + $0x18] sm:$0xff] }
  0x4d   :  { %664 = vmatprep.subr.mxu0 %v131_v2  ;;  %v120_v14 = vld [vmem:[#allocation5 + $0x10] sm:$0xff]  ;;  %v119_v15 = vld [vmem:[#allocation5 + $0x8] sm:$0xff]  ;;  %v118_v16 = vld [vmem:[#allocation5] sm:$0xff] }
  0x4e   :  { %665 = vmatpush3.msra.mxu0 %v131_v2  ;;  %v106_v17 = vld [vmem:[#allocation2 + $0x8] sm:$0xff]  ;;  %v593_v19 = vld [vmem:[#allocation10] ss:$0 sm:$0xff]  ;;  %v267_v26 = vld [vmem:[#allocation7 + $0x70] sm:$0xff] }
  0x4f   :  { %666 = vmatprep.subr.mxu0 %v130_v3  ;;  %v268_v25 = vld [vmem:[#allocation7 + $0x78] sm:$0xff]  ;;  %v266_v27 = vld [vmem:[#allocation7 + $0x68] sm:$0xff]  ;;  %v265_v28 = vld [vmem:[#allocation7 + $0x60] sm:$0xff] }
  0x50   :  { %667 = vmatpush3.msra.mxu0 %v130_v3  ;;  %695 = vmatprep.subr.mxu1 %v268_v25  ;;  %v264_v29 = vld [vmem:[#allocation7 + $0x58] sm:$0xff]  ;;  %v263_v30 = vld [vmem:[#allocation7 + $0x50] sm:$0xff]  ;;  %v262_v31 = vld [vmem:[#allocation7 + $0x48] sm:$0xff] }
  0x51   :  { %668 = vmatprep.subr.mxu0 %v129_v5  ;;  %696 = vmatpush3.msra.mxu1 %v268_v25  ;;  %v261_v32 = vld [vmem:[#allocation7 + $0x40] sm:$0xff]  ;;  %v260_v33 = vld [vmem:[#allocation7 + $0x38] sm:$0xff]  ;;  %v259_v34 = vld [vmem:[#allocation7 + $0x30] sm:$0xff] }
  0x52   :  { %669 = vmatpush3.msra.mxu0 %v129_v5  ;;  %697 = vmatprep.subr.mxu1 %v267_v26  ;;  %v258_v35 = vld [vmem:[#allocation7 + $0x28] sm:$0xff]  ;;  %v257_v36 = vld [vmem:[#allocation7 + $0x20] sm:$0xff]  ;;  %v256_v37 = vld [vmem:[#allocation7 + $0x18] sm:$0xff] }
  0x53   :  { %670 = vmatprep.subr.mxu0 %v128_v6  ;;  %698 = vmatpush3.msra.mxu1 %v267_v26  ;;  %v255_v38 = vld [vmem:[#allocation7 + $0x10] sm:$0xff]  ;;  %v254_v39 = vld [vmem:[#allocation7 + $0x8] sm:$0xff]  ;;  %v253_v40 = vld [vmem:[#allocation7] sm:$0xff] }
  0x54   :  { %671 = vmatpush3.msra.mxu0 %v128_v6  ;;  %699 = vmatprep.subr.mxu1 %v266_v27  ;;  %v594_v57 = vld [vmem:[#allocation10 + $0x1] ss:$0 sm:$0xff]  ;;  %v595_v59 = vld [vmem:[#allocation10 + $0x2] ss:$0 sm:$0xff]  ;;  %v596_v5 = vld [vmem:[#allocation11] ss:$0 sm:$0xff] }
  0x55   :  { %672 = vmatprep.subr.mxu0 %v127_v7  ;;  %700 = vmatpush3.msra.mxu1 %v266_v27  ;;  %v390_v25 = vld [vmem:[#allocation8 + $0x10] sm:$0xff]  ;;  %v389_v26 = vld [vmem:[#allocation8 + $0x8] sm:$0xff]  ;;  %v388_v27 = vld [vmem:[#allocation8] sm:$0xff] }
  0x56   :  { %673 = vmatpush3.msra.mxu0 %v127_v7  ;;  %701 = vmatprep.subr.mxu1 %v265_v28 }
  0x57   :  { %674 = vmatprep.subr.mxu0 %v126_v8  ;;  %702 = vmatpush3.msra.mxu1 %v265_v28 }
  0x58   :  { %675 = vmatpush3.msra.mxu0 %v126_v8  ;;  %703 = vmatprep.subr.mxu1 %v264_v29 }
  0x59   :  { %676 = vmatprep.subr.mxu0 %v125_v9  ;;  %704 = vmatpush3.msra.mxu1 %v264_v29 }
  0x5a   :  { %677 = vmatpush3.msra.mxu0 %v125_v9  ;;  %705 = vmatprep.subr.mxu1 %v263_v30 }
  0x5b   :  { %678 = vmatprep.subr.mxu0 %v124_v10  ;;  %706 = vmatpush3.msra.mxu1 %v263_v30 }
  0x5c   :  { %679 = vmatpush3.msra.mxu0 %v124_v10  ;;  %707 = vmatprep.subr.mxu1 %v262_v31 }
  0x5d   :  { %680 = vmatprep.subr.mxu0 %v123_v11  ;;  %708 = vmatpush3.msra.mxu1 %v262_v31 }
  0x5e   :  { %681 = vmatpush3.msra.mxu0 %v123_v11  ;;  %709 = vmatprep.subr.mxu1 %v261_v32 }
  0x5f   :  { %682 = vmatprep.subr.mxu0 %v122_v12  ;;  %710 = vmatpush3.msra.mxu1 %v261_v32 }
  0x60   :  { %683 = vmatpush3.msra.mxu0 %v122_v12  ;;  %711 = vmatprep.subr.mxu1 %v260_v33  ;;  %v403_v12 = vld [vmem:[#allocation8 + $0x78] sm:$0xff] }
  0x61   :  { %684 = vmatprep.subr.mxu0 %v121_v13  ;;  %712 = vmatpush3.msra.mxu1 %v260_v33 }
  0x62   :  { %685 = vmatpush3.msra.mxu0 %v121_v13  ;;  %713 = vmatprep.subr.mxu1 %v259_v34  ;;  %v402_v13 = vld [vmem:[#allocation8 + $0x70] sm:$0xff] }
  0x63   :  { %686 = vmatprep.subr.mxu0 %v120_v14  ;;  %714 = vmatpush3.msra.mxu1 %v259_v34 }
  0x64   :  { %687 = vmatpush3.msra.mxu0 %v120_v14  ;;  %715 = vmatprep.subr.mxu1 %v258_v35  ;;  %v401_v14 = vld [vmem:[#allocation8 + $0x68] sm:$0xff] }
  0x65   :  { %688 = vmatprep.subr.mxu0 %v119_v15  ;;  %716 = vmatpush3.msra.mxu1 %v258_v35 }
  0x66   :  { %689 = vmatpush3.msra.mxu0 %v119_v15  ;;  %717 = vmatprep.subr.mxu1 %v257_v36  ;;  %v400_v15 = vld [vmem:[#allocation8 + $0x60] sm:$0xff] }
  0x67   :  { %690 = vmatprep.subr.mxu0 %v118_v16  ;;  %718 = vmatpush3.msra.mxu1 %v257_v36 }
  0x68   :  { %691 = vmatpush3.msra.mxu0 %v118_v16  ;;  %719 = vmatprep.subr.mxu1 %v256_v37  ;;  %v399_v16 = vld [vmem:[#allocation8 + $0x58] sm:$0xff] }
  0x69   :  { %693 = vmatmul.mubr.f32.vlgmr.msra.gmra.mxu0 %v106_v17  ;;  %720 = vmatpush3.msra.mxu1 %v256_v37  ;;  %v398_v17 = vld [vmem:[#allocation8 + $0x50] sm:$0xff] }
  0x6a   :  { %721 = vmatprep.subr.mxu1 %v255_v38  ;;  %730 = vmatprep.subr.mxu0 %v403_v12 }
  0x6b   :  { %722 = vmatpush3.msra.mxu1 %v255_v38  ;;  %731 = vmatpush3.msra.mxu0 %v403_v12 }
  0x6c   :  { %723 = vmatprep.subr.mxu1 %v254_v39  ;;  %732 = vmatprep.subr.mxu0 %v402_v13 }
  0x6d   :  { %724 = vmatpush3.msra.mxu1 %v254_v39  ;;  %733 = vmatpush3.msra.mxu0 %v402_v13 }
  0x6e   :  { %725 = vmatprep.subr.mxu1 %v253_v40  ;;  %734 = vmatprep.subr.mxu0 %v401_v14 }
  0x6f   :  { %726 = vmatpush3.msra.mxu1 %v253_v40  ;;  %735 = vmatpush3.msra.mxu0 %v401_v14 }
  0x70   :  { %736 = vmatprep.subr.mxu0 %v400_v15 }
  0x71   :  { %737 = vmatpush3.msra.mxu0 %v400_v15  ;;  %v600_v15 = vld [vmem:[%s1078_s6 + $0x1] ss:$0 sm:$0xff] }
  0x72   :  { %738 = vmatprep.subr.mxu0 %v399_v16 }
  0x73   :  { %739 = vmatpush3.msra.mxu0 %v399_v16 }
  0x74   :  { %740 = vmatprep.subr.mxu0 %v398_v17 }
  0x75   :  { %741 = vmatpush3.msra.mxu0 %v398_v17 }
 0x129   :  { %v694_v18 = vpop.f32.mrf.mxu0 }
 0x12a   :  { %v1029_v22 = vadd.f32 %v694_v18, %v593_v19  ;;  %v397_v18 = vld [vmem:[#allocation8 + $0x48] sm:$0xff] }
 0x12b   :  { %v204_v20 = vpop.f32.mrf.mxu0  ;;  %742 = vmatprep.subr.mxu0 %v397_v18 }
 0x12c   :  { %v1027_v21 = vadd.f32 %v593_v19, %v204_v20  ;;  %v220_v24 = vmul.f32 %v1029_v22, %v1029_v22  ;;  %v396_v19 = vld [vmem:[#allocation8 + $0x40] sm:$0xff]  ;;  %743 = vmatpush3.msra.mxu0 %v397_v18  ;;  %v395_v20 = vld [vmem:[#allocation8 + $0x38] sm:$0xff] }
 0x12d   :  { %744 = vmatprep.subr.mxu0 %v396_v19 }
 0x12e   :  { %213 = vadd.xlane.f32.xlu0 %v1027_v21  ;;  %v219_v23 = vmul.f32 %v1027_v21, %v1027_v21  ;;  %745 = vmatpush3.msra.mxu0 %v396_v19  ;;  %v601_v19 = vld [vmem:[%s1078_s6 + $0x2] ss:$0 sm:$0xff] }
 0x12f   :  { %746 = vmatprep.subr.mxu0 %v395_v20 }
 0x130   :  { %221 = vadd.xlane.f32.xlu1 %v219_v23  ;;  %747 = vmatpush3.msra.mxu0 %v395_v20  ;;  %v392_v23 = vld [vmem:[#allocation8 + $0x20] sm:$0xff] }
 0x132   :  { %215 = vadd.xlane.f32.xlu0 %v1029_v22 }
 0x134   :  { %223 = vadd.xlane.f32.xlu1 %v220_v24  ;;  %v391_v24 = vld [vmem:[#allocation8 + $0x18] sm:$0xff] }
 0x1b7   :  { %v214_v41 = vpop.xlane.xlu0 %213 }
 0x1b8   :  { %v217_v42 = vmul.f32 0.015625, %v214_v41 }
 0x1b9   :  { %v222_v43 = vpop.xlane.xlu1 %221 }
 0x1ba   :  { %v227_v44 = vmul.f32 %v217_v42, %v217_v42  ;;  %v225_v45 = vmul.f32 0.015625, %v222_v43  ;;  %v231_v55 = vsub.f32 %v1027_v21, %v217_v42  ;;  %v394_v21 = vld [vmem:[#allocation8 + $0x30] sm:$0xff] }
 0x1bb   :  { %v216_v46 = vpop.xlane.xlu0 %215  ;;  %748 = vmatprep.subr.mxu0 %v394_v21 }
 0x1bc   :  { %v229_v47 = vsub.f32 %v225_v45, %v227_v44  ;;  %v218_v48 = vmul.f32 0.015625, %v216_v46  ;;  %749 = vmatpush3.msra.mxu0 %v394_v21  ;;  %v597_v44 = vld [vmem:[#allocation11 + $0x1] ss:$0 sm:$0xff] }
 0x1bd   :  { %v224_v49 = vpop.xlane.xlu1 %223 }
 0x1be   :  { %v233_v50 = vadd.f32 1e-05, %v229_v47  ;;  %v228_v51 = vmul.f32 %v218_v48, %v218_v48  ;;  %v226_v52 = vmul.f32 0.015625, %v224_v49  ;;  %v232_v60 = vsub.f32 %v1029_v22, %v218_v48  ;;  %v393_v22 = vld [vmem:[#allocation8 + $0x28] sm:$0xff]  ;;  %v598_v48 = vld [vmem:[#allocation11 + $0x2] ss:$0 sm:$0xff] }
 0x1bf   :  { %750 = vmatprep.subr.mxu0 %v393_v22 }
 0x1c0   :  { %774 = vrsqrt.f32 %v233_v50  ;;  %v230_v53 = vsub.f32 %v226_v52, %v228_v51  ;;  %751 = vmatpush3.msra.mxu0 %v393_v22 }
 0x1c1   :  { %752 = vmatprep.subr.mxu0 %v392_v23 }
 0x1c2   :  { %v234_v54 = vadd.f32 1e-05, %v230_v53  ;;  %753 = vmatpush3.msra.mxu0 %v392_v23 }
 0x1c3   :  { %754 = vmatprep.subr.mxu0 %v391_v24 }
 0x1c4   :  { %776 = vrsqrt.f32 %v234_v54  ;;  %755 = vmatpush3.msra.mxu0 %v391_v24 }
 0x1c5   :  { %756 = vmatprep.subr.mxu0 %v390_v25 }
 0x1c6   :  { %757 = vmatpush3.msra.mxu0 %v390_v25 }
 0x1c7   :  { %758 = vmatprep.subr.mxu0 %v389_v26 }
 0x1c8   :  { %759 = vmatpush3.msra.mxu0 %v389_v26 }
 0x1c9   :  { %760 = vmatprep.subr.mxu0 %v388_v27 }
 0x1ca   :  { %761 = vmatpush3.msra.mxu0 %v388_v27 }
 0x1cd   :  { %v775_v56 = vpop.eup %774 }
 0x1ce   :  { %v237_v58 = vmul.f32 %v775_v56, %v231_v55  ;;  %v599_v56 = vld [vmem:[%s1078_s6] ss:$0 sm:$0xff] }
 0x1d0   :  { %v243_v61 = vmul.f32 %v594_v57, %v237_v58 }
 0x1d1   :  { %v777_v62 = vpop.eup %776 }
 0x1d2   :  { %v238_v63 = vmul.f32 %v777_v62, %v232_v60  ;;  %v249_v0 = vadd.f32 %v595_v59, %v243_v61 }
 0x1d4   :  { %v244_v1 = vmul.f32 %v594_v57, %v238_v63  ;;  %v251_v2 = vmax.f32 %v249_v0, 0.0 }
 0x1d6   :  { %v250_v3 = vadd.f32 %v595_v59, %v244_v1  ;;  %727 = vmatprep.mubr.f32.mxu1 %v251_v2 }
 0x1d8   :  { %v252_v4 = vmax.f32 %v250_v3, 0.0 }
 0x1da   :  { %728 = vmatmul.mubr.f32.vlgmr.msra.gmra.mxu1 %v252_v4 }
 0x29a   :  { %v729_v6 = vpop.f32.mrf.mxu1 }
 0x29b   :  { %v1039_v7 = vadd.f32 %v729_v6, %v596_v5 }
 0x29c   :  { %v339_v8 = vpop.f32.mrf.mxu1 }
 0x29d   :  { %v1041_v9 = vadd.f32 %v596_v5, %v339_v8  ;;  %350 = vadd.xlane.f32.xlu1 %v1039_v7  ;;  %v355_v10 = vmul.f32 %v1039_v7, %v1039_v7 }
 0x29f   :  { %348 = vadd.xlane.f32.xlu0 %v1041_v9  ;;  %v354_v11 = vmul.f32 %v1041_v9, %v1041_v9 }
 0x2a1   :  { %358 = vadd.xlane.f32.xlu1 %v355_v10 }
 0x2a3   :  { %356 = vadd.xlane.f32.xlu0 %v354_v11 }
 0x326   :  { %v351_v28 = vpop.xlane.xlu1 %350 }
 0x327   :  { %v353_v29 = vmul.f32 0.03125, %v351_v28 }
 0x328   :  { %v349_v30 = vpop.xlane.xlu0 %348 }
 0x329   :  { %v352_v31 = vmul.f32 0.03125, %v349_v30  ;;  %v363_v33 = vmul.f32 %v353_v29, %v353_v29  ;;  %v367_v42 = vsub.f32 %v1039_v7, %v353_v29 }
 0x32a   :  { %v359_v32 = vpop.xlane.xlu1 %358 }
 0x32b   :  { %v361_v34 = vmul.f32 0.03125, %v359_v32  ;;  %v362_v36 = vmul.f32 %v352_v31, %v352_v31  ;;  %v366_v45 = vsub.f32 %v1041_v9, %v352_v31 }
 0x32c   :  { %v357_v35 = vpop.xlane.xlu0 %356 }
 0x32d   :  { %v365_v37 = vsub.f32 %v361_v34, %v363_v33  ;;  %v360_v38 = vmul.f32 0.03125, %v357_v35 }
 0x32f   :  { %v369_v39 = vadd.f32 1e-05, %v365_v37  ;;  %v364_v40 = vsub.f32 %v360_v38, %v362_v36 }
 0x331   :  { %778 = vrsqrt.f32 %v369_v39  ;;  %v368_v41 = vadd.f32 1e-05, %v364_v40 }
 0x333   :  { %780 = vrsqrt.f32 %v368_v41 }
 0x33e   :  { %v779_v43 = vpop.eup %778 }
 0x33f   :  { %v373_v46 = vmul.f32 %v779_v43, %v367_v42  ;;  %v602_v43 = vld [vmem:[%s1078_s6 + $0x3] ss:$0 sm:$0xff] }
 0x340   :  { %v781_v47 = vpop.eup %780 }
 0x341   :  { %v372_v49 = vmul.f32 %v781_v47, %v366_v45  ;;  %v379_v50 = vmul.f32 %v597_v44, %v373_v46  ;;  %v603_v47 = vld [vmem:[%s1078_s6 + $0x4] ss:$0 sm:$0xff]  ;;  %s918_s6 = scalar_lea.vmem %s579_s1, 256 }
 0x342   :  { %p919_p2 = scmp.ne.s32.totalorder %s579_s1, %s918_s6  ;;  %p924_p4 = scmp.lt.s32.totalorder %s918_s6, %s918_s6 }
 0x343   :  { %v378_v51 = vmul.f32 %v597_v44, %v372_v49  ;;  %v385_v52 = vadd.f32 %v598_v48, %v379_v50 }
 0x344   :  { %p925_p5 = por %p924_p4, %p923_p3 }
 0x345   :  { %v384_v53 = vadd.f32 %v598_v48, %v378_v51  ;;  %v387_v55 = vmax.f32 %v385_v52, 0.0 }
 0x346   :  { %p926_p6 = pnand %p925_p5, %p919_p2 }
 0x347   :  { %v386_v54 = vmax.f32 %v384_v53, 0.0 }
 0x349   :  { %762 = vmatprep.mubr.f32.mxu0 %v386_v54 }
 0x34a   :  { %763 = vmatmul.mubr.f32.vlgmr.msra.gmra.mxu0 %v387_v55 }
 0x40a   :  { %v764_v57 = vpop.f32.mrf.mxu0 }
 0x40b   :  { %v480_v58 = vadd.f32 %v764_v57, %v599_v56 }
 0x40c   :  { %v474_v59 = vpop.f32.mrf.mxu0 }
 0x40d   :  { %v475_v60 = vadd.f32 %v599_v56, %v474_v59  ;;  %485 = vadd.xlane.f32.xlu1 %v480_v58  ;;  %v490_v61 = vmul.f32 %v480_v58, %v480_v58 }
 0x40f   :  { %483 = vadd.xlane.f32.xlu0 %v475_v60  ;;  %v489_v62 = vmul.f32 %v475_v60, %v475_v60 }
 0x411   :  { %493 = vadd.xlane.f32.xlu1 %v490_v61 }
 0x413   :  { %491 = vadd.xlane.f32.xlu0 %v489_v62 }
 0x496   :  { %v486_v63 = vpop.xlane.xlu1 %485 }
 0x497   :  { %v488_v0 = vmul.f32 0.2, %v486_v63 }
 0x498   :  { %v484_v1 = vpop.xlane.xlu0 %483 }
 0x499   :  { %v487_v2 = vmul.f32 0.2, %v484_v1  ;;  %v498_v4 = vmul.f32 %v488_v0, %v488_v0  ;;  %v502_v13 = vsub.f32 %v480_v58, %v488_v0 }
 0x49a   :  { %v494_v3 = vpop.xlane.xlu1 %493 }
 0x49b   :  { %v496_v5 = vmul.f32 0.2, %v494_v3  ;;  %v497_v7 = vmul.f32 %v487_v2, %v487_v2  ;;  %v501_v16 = vsub.f32 %v475_v60, %v487_v2 }
 0x49c   :  { %v492_v6 = vpop.xlane.xlu0 %491 }
 0x49d   :  { %v500_v8 = vsub.f32 %v496_v5, %v498_v4  ;;  %v495_v9 = vmul.f32 0.2, %v492_v6 }
 0x49f   :  { %v504_v10 = vadd.f32 1e-05, %v500_v8  ;;  %v499_v11 = vsub.f32 %v495_v9, %v497_v7 }
 0x4a1   :  { %782 = vrsqrt.f32 %v504_v10  ;;  %v503_v12 = vadd.f32 1e-05, %v499_v11 }
 0x4a3   :  { %784 = vrsqrt.f32 %v503_v12 }
 0x4ae   :  { %v783_v14 = vpop.eup %782 }
 0x4af   :  { %v508_v17 = vmul.f32 %v783_v14, %v502_v13 }
 0x4b0   :  { %v785_v18 = vpop.eup %784 }
 0x4b1   :  { %v514_v20 = vmul.f32 %v600_v15, %v508_v17  ;;  %v507_v21 = vmul.f32 %v785_v18, %v501_v16 }
 0x4b3   :  { %v520_v22 = vadd.f32 %v601_v19, %v514_v20  ;;  %v513_v23 = vmul.f32 %v600_v15, %v507_v21 }
 0x4b5   :  { %523 = vadd.xlane.f32.xlu1 %v520_v22  ;;  %v519_v24 = vadd.f32 %v601_v19, %v513_v23  ;;  %v528_v25 = vmul.f32 %v520_v22, %v520_v22 }
 0x4b7   :  { %521 = vadd.xlane.f32.xlu0 %v519_v24  ;;  %v527_v26 = vmul.f32 %v519_v24, %v519_v24 }
 0x4b9   :  { %531 = vadd.xlane.f32.xlu1 %v528_v25 }
 0x4bb   :  { %529 = vadd.xlane.f32.xlu0 %v527_v26 }
 0x53e   :  { %v524_v27 = vpop.xlane.xlu1 %523 }
 0x53f   :  { %v526_v28 = vmul.f32 0.2, %v524_v27 }
 0x540   :  { %v522_v29 = vpop.xlane.xlu0 %521 }
 0x541   :  { %v525_v30 = vmul.f32 0.2, %v522_v29  ;;  %v536_v32 = vmul.f32 %v526_v28, %v526_v28  ;;  %v540_v41 = vsub.f32 %v520_v22, %v526_v28 }
 0x542   :  { %v532_v31 = vpop.xlane.xlu1 %531 }
 0x543   :  { %v534_v33 = vmul.f32 0.2, %v532_v31  ;;  %v535_v35 = vmul.f32 %v525_v30, %v525_v30  ;;  %v539_v44 = vsub.f32 %v519_v24, %v525_v30 }
 0x544   :  { %v530_v34 = vpop.xlane.xlu0 %529 }
 0x545   :  { %v538_v36 = vsub.f32 %v534_v33, %v536_v32  ;;  %v533_v37 = vmul.f32 0.2, %v530_v34 }
 0x547   :  { %v542_v38 = vadd.f32 1e-05, %v538_v36  ;;  %v537_v39 = vsub.f32 %v533_v37, %v535_v35 }
 0x549   :  { %786 = vrsqrt.f32 %v542_v38  ;;  %v541_v40 = vadd.f32 1e-05, %v537_v39 }
 0x54b   :  { %788 = vrsqrt.f32 %v541_v40 }
 0x556   :  { %v787_v42 = vpop.eup %786 }
 0x557   :  { %v546_v45 = vmul.f32 %v787_v42, %v540_v41 }
 0x558   :  { %v789_v46 = vpop.eup %788 }
 0x559   :  { %v552_v48 = vmul.f32 %v602_v43, %v546_v45  ;;  %v545_v49 = vmul.f32 %v789_v46, %v539_v44 }
 0x55b   :  { %v558_v50 = vadd.f32 %v603_v47, %v552_v48  ;;  %v551_v51 = vmul.f32 %v602_v43, %v545_v49 }
 0x55d   :  { %v605_v52 = vmul.f32 -1.442695, %v558_v50  ;;  %v557_v53 = vadd.f32 %v603_v47, %v551_v51 }
 0x55f   :  { %v604_v54 = vmul.f32 -1.442695, %v557_v53  ;;  %790 = vpow2.f32 %v605_v52 }
 0x561   :  { %792 = vpow2.f32 %v604_v54 }
 0x56c   :  { %v791_v55 = vpop.eup %790 }
 0x56d   :  { %v566_v56 = vadd.f32 1.0, %v791_v55 }
 0x56e   :  { %v793_v57 = vpop.eup %792 }
 0x56f   :  { %v565_v58 = vadd.f32 1.0, %v793_v57  ;;  %794 = vrcp.f32 %v566_v56 }
 0x571   :  { %796 = vrcp.f32 %v565_v58 }
 0x57c   :  { %v795_v59 = vpop.eup %794 }
 0x57d   :  { %572 = vst [vmem:[#allocation13 + $0x8] sm:$0xff] %v795_v59 }
 0x57e   :  { %v797_v60 = vpop.eup %796 }
 0x57f   :  { %571 = vst [vmem:[#allocation13] sm:$0xff] %v797_v60 }
 0x580   :  { %929 = shalt.err (!%p926_p6)
}
 0x581   :  { %584 = dma.vmem_to_hbm [thread:$0]  %s579_s1, 256, %s1079_s7, [#allocation4], %s950_s29, %s950_s29, %s951_s30  }
 0x582   :  { %946 = dma.done.wait [#allocation4], 256  }
 0x583   :  { %947 = vsyncadd [#allocation4], 4294967040 }
 0x584   :  { %588 = vsyncpa [#allocation3], 1 }
 0x585   :  { %589 = vsyncpa [#allocation6], 1 }
 0x586   :  { %590 = vsyncpa [#allocation9], 1 }
 0x587   :  { %591 = vsyncpa [#allocation12], 1 }
 0x588   :  { %592 = vsyncpa [#allocation4], 1 }

</bundles_post_ra>
